<compile_context>
chip_gen: v7x
topology: tpu7x:2x2x1
jax: 0.10.0
libtpu: 0.0.40
codegen_flags: <defaults>
</compile_context>

<pallas_src>
import functools
from math import gcd

import jax
import jax.numpy as jnp
from jax import lax
from jax.experimental import pallas as pl
from jax.experimental.pallas import tpu as pltpu


def _round_up(x, m):
    return (x + m - 1) // m * m


# ----------------------------------------------------------------------------
# Fused PostRes kernel (one image per grid step).
# ----------------------------------------------------------------------------
def _postres_kernel(x_ref, m_ref, w1_ref, g1_ref, b1_ref,
                    w2_ref, g2_ref, b2_ref, *rest,
                    stride, num_groups, act, has_down, H, W, Ho, Wo,
                    HW, Npad, Cr, Cout, compute_dtype, eps=1e-5):
    """Whole PostRes block for one image.

    Layout: channels on sublanes, the flattened H*W grid (zero-padded to Npad,
    a multiple of 128) on lanes.  Conv taps are lane rotations of the dense
    activation; zero padding of the convolution is realised by per-tap masks
    (precomputed host-side), so no padded scratch image is ever materialized.
    """
    if has_down:
        wd_ref, gd_ref, bd_ref, out_ref, rhs_ref = rest
    else:
        out_ref, rhs_ref = rest

    two_sets = stride > 1
    x = x_ref[0, :, :]                                    # (Cr, Npad) f32

    # Lattice mask (only needed for strided GroupNorm statistics); hoist the
    # sublane broadcast once and reuse it for all three GN calls.
    if two_sets:
        lat_b = jnp.broadcast_to(m_ref[18:19, :], (Cout, Npad))
        n_valid = float(Ho * Wo)
    else:
        lat_b = None
        n_valid = float(H * W)

    def build_rhs(v, step, mask_base, nrows):
        # Write the 9 rolled+masked tap chunks of `v` into the persistent,
        # sublane-aligned rhs scratch (im2col without any padded image).
        for dh in range(3):
            for dw in range(3):
                t = dh * 3 + dw
                d = (dh - 1) * step * W + (dw - 1) * step
                tap = v if d == 0 else pltpu.roll(v, shift=(-d) % Npad, axis=1)
                # Center tap at step 1 has an all-ones mask when Npad == HW.
                if not (d == 0 and step == 1 and Npad == HW):
                    tap = tap * m_ref[mask_base + t:mask_base + t + 1, :]
                rhs_ref[t * Cr:t * Cr + nrows, :] = tap.astype(compute_dtype)

    def group_norm(v, gamma, beta):
        # v is the f32 conv accumulation; for stride==1 it is exactly zero at
        # every non-image lane, so no mask is needed in the statistics.
        # NOTE: E[x^2] - mean^2 is kept in f32 (accumulations never drop to
        # bf16), with a clamp; benign at GroupNorm scales.
        cpg = Cout // num_groups
        n = float(cpg) * n_valid
        vm = v if lat_b is None else v * lat_b
        if cpg == 1:
            s1 = jnp.sum(vm, axis=1, keepdims=True)                  # (Cout, 1)
            s2 = jnp.sum(vm * v, axis=1, keepdims=True)
            mean = s1 / n
            var = jnp.maximum(s2 / n - mean * mean, 0.0)
            vn = (v - mean) * lax.rsqrt(var + eps)
        else:
            v3 = vm.reshape(num_groups, cpg, Npad)
            s1 = jnp.sum(jnp.sum(v3, axis=2, keepdims=True),
                         axis=1, keepdims=True)                      # (G,1,1)
            s2 = jnp.sum(jnp.sum((vm * v).reshape(num_groups, cpg, Npad),
                                 axis=2, keepdims=True),
                         axis=1, keepdims=True)
            mean = s1 / n
            var = jnp.maximum(s2 / n - mean * mean, 0.0)
            vn = ((v.reshape(num_groups, cpg, Npad) - mean)
                  * lax.rsqrt(var + eps)).reshape(Cout, Npad)
        return vn * gamma + beta

    # ---- conv1 -> GN1 -> ReLU ------------------------------------------------
    build_rhs(x, 1, 0, Cr)
    acc1 = jnp.dot(w1_ref[...], rhs_ref[...],
                   preferred_element_type=jnp.float32)               # (Cout, Npad)
    y1 = jnp.maximum(group_norm(acc1, g1_ref[...], b1_ref[...]), 0.0)

    # ---- conv2 -> GN2 (stride handled by scaling tap offsets / masks) --------
    build_rhs(y1, stride, 9 if two_sets else 0, Cout)
    acc2 = jnp.dot(w2_ref[...], rhs_ref[...],
                   preferred_element_type=jnp.float32)
    y2 = group_norm(acc2, g2_ref[...], b2_ref[...])

    # ---- skip branch ----------------------------------------------------------
    if has_down:
        sk = jnp.dot(wd_ref[...], x.astype(compute_dtype),
                     preferred_element_type=jnp.float32)             # 1x1 conv
        sk = group_norm(sk, gd_ref[...], bd_ref[...])
    else:
        sk = x[:Cout, :]                                             # identity

    out = y2 + sk
    if act:
        out = jnp.maximum(out, 0.0)

    # single lane-dense store
    out_ref[0, :, :] = out.astype(out_ref.dtype)


# ----------------------------------------------------------------------------
# Public wrapper: NCHW in / NCHW out, like the PyTorch module.
# ----------------------------------------------------------------------------
def _conv3x3_to_mat(w, Cr):
    # (Cout, Cin, 3, 3) -> (Cout, 9*Cr); column t*Cr+ci <-> tap t=dh*3+dw, chan ci.
    Co, Ci = w.shape[0], w.shape[1]
    wt = jnp.transpose(w, (2, 3, 1, 0)).reshape(9, Ci, Co)
    wt = jnp.pad(wt, ((0, 0), (0, Cr - Ci), (0, 0)))        # zero rows for padded chans
    return jnp.transpose(wt, (2, 0, 1)).reshape(Co, 9 * Cr)


def postres_forward(x_nchw, params, *, stride=1, act=True, num_groups=1,
                    compute_dtype=jnp.bfloat16):
    B, Cin, H, W = x_nchw.shape
    Cout = params["w1"].shape[0]
    assert Cout % num_groups == 0, "GroupNorm requires C % num_groups == 0"
    has_down = "wd" in params
    assert has_down or (stride == 1 and Cin == Cout)

    HW = H * W
    Npad = _round_up(HW, 128)               # lane-dense tiles everywhere
    Cr = _round_up(max(Cin, Cout), 8)       # sublane-aligned tap chunks
    Ho = (H - 1) // stride + 1
    Wo = (W - 1) // stride + 1
    f32 = jnp.float32

    # ---- host-side prep (tiny) ----------------------------------------------
    x_flat = x_nchw.reshape(B, Cin, HW).astype(f32)
    x_flat = jnp.pad(x_flat, ((0, 0), (0, Cr - Cin), (0, Npad - HW)))

    idx = jnp.arange(Npad, dtype=jnp.int32)
    row, col = idx // W, idx % W
    valid = idx < HW

    def tap_masks(step, hlim, wlim):
        ms = []
        for dh in range(3):
            for dw in range(3):
                rs = row + (dh - 1) * step
                cs = col + (dw - 1) * step
                ms.append(valid & (rs >= 0) & (rs < hlim) & (cs >= 0) & (cs < wlim))
        return jnp.stack(ms, 0).astype(f32)                          # (9, Npad)

    if stride == 1:
        masks = tap_masks(1, H, W)
    else:
        lat = (valid & (row % stride == 0) & (col % stride == 0)
               & (row < Ho * stride) & (col < Wo * stride))
        masks = jnp.concatenate([tap_masks(1, H, W),
                                 tap_masks(stride, Ho * stride, Wo * stride),
                                 lat[None].astype(f32)], axis=0)     # (19, Npad)
    n_masks = masks.shape[0]

    w1m = _conv3x3_to_mat(params["w1"], Cr).astype(compute_dtype)
    w2m = _conv3x3_to_mat(params["w2"], Cr).astype(compute_dtype)
    g1 = params["gamma1"].reshape(Cout, 1).astype(f32)
    b1 = params["beta1"].reshape(Cout, 1).astype(f32)
    g2 = params["gamma2"].reshape(Cout, 1).astype(f32)
    b2 = params["beta2"].reshape(Cout, 1).astype(f32)

    args = [x_flat, masks, w1m, g1, b1, w2m, g2, b2]
    in_specs = [
        pl.BlockSpec((1, Cr, Npad), lambda b: (b, 0, 0)),
        pl.BlockSpec((n_masks, Npad), lambda b: (0, 0)),
        pl.BlockSpec((Cout, 9 * Cr), lambda b: (0, 0)),
        pl.BlockSpec((Cout, 1), lambda b: (0, 0)),
        pl.BlockSpec((Cout, 1), lambda b: (0, 0)),
        pl.BlockSpec((Cout, 9 * Cr), lambda b: (0, 0)),
        pl.BlockSpec((Cout, 1), lambda b: (0, 0)),
        pl.BlockSpec((Cout, 1), lambda b: (0, 0)),
    ]
    if has_down:
        wdm = jnp.pad(params["wd"][:, :, 0, 0],
                      ((0, 0), (0, Cr - Cin))).astype(compute_dtype)
        gd = params["gammad"].reshape(Cout, 1).astype(f32)
        bd = params["betad"].reshape(Cout, 1).astype(f32)
        args += [wdm, gd, bd]
        in_specs += [
            pl.BlockSpec((Cout, Cr), lambda b: (0, 0)),
            pl.BlockSpec((Cout, 1), lambda b: (0, 0)),
            pl.BlockSpec((Cout, 1), lambda b: (0, 0)),
        ]

    kernel = functools.partial(
        _postres_kernel, stride=stride, num_groups=num_groups, act=act,
        has_down=has_down, H=H, W=W, Ho=Ho, Wo=Wo, HW=HW, Npad=Npad,
        Cr=Cr, Cout=Cout, compute_dtype=compute_dtype)

    # VMEM budget: raise above the default when the fused block needs it, but
    # stay well under v7x's 64 MiB physical VMEM (larger shapes: see TODO on
    # spatial tiling).
    cbytes = jnp.dtype(compute_dtype).itemsize
    blk = (Cr * Npad * 4 + n_masks * Npad * 4 + Cout * Npad * 4
           + 2 * Cout * 9 * Cr * cbytes + Cout * Cr * cbytes + 6 * Cout * 4)
    est = 2 * blk + 9 * Cr * Npad * cbytes + 8 * Cout * Npad * 4 + 2 * Cr * Npad * 4
    vmem_limit = int(min(max(32 * 1024 * 1024, 2 * est), 56 * 1024 * 1024))

    out = pl.pallas_call(
        kernel,
        out_shape=jax.ShapeDtypeStruct((B, Cout, Npad), f32),
        grid=(B,),
        in_specs=in_specs,
        out_specs=pl.BlockSpec((1, Cout, Npad), lambda b: (b, 0, 0)),
        scratch_shapes=[
            pltpu.VMEM((9 * Cr, Npad), compute_dtype),   # persistent im2col rhs
        ],
        compiler_params=pltpu.CompilerParams(
            dimension_semantics=("parallel",),          # batch splits across TCs
            vmem_limit_bytes=vmem_limit),
    )(*args)

    out = out[:, :, :HW].reshape(B, Cout, H, W)
    if stride == 1:
        return out
    # stride > 1: outputs live on the (Ho, Wo) lattice of the embedded grid.
    return out[:, :, :(Ho - 1) * stride + 1:stride, :(Wo - 1) * stride + 1:stride]


# ----------------------------------------------------------------------------
# Parameter init (matches the PyTorch module's structure).
# ----------------------------------------------------------------------------
def postres_init(key, n_in, n_out, stride=1, ng=32):
    G = gcd(ng, n_out)
    ks = jax.random.split(key, 9)

    def conv_w(k, shape):
        fan_in = shape[1] * shape[2] * shape[3]
        bound = 1.0 / (fan_in ** 0.5)
        return jax.random.uniform(k, shape, jnp.float32, -bound, bound)

    params = {
        "w1": conv_w(ks[0], (n_out, n_in, 3, 3)),
        "gamma1": jax.random.uniform(ks[1], (n_out,), jnp.float32, 0.5, 1.5),
        "beta1": jax.random.uniform(ks[2], (n_out,), jnp.float32, -0.5, 0.5),
        "w2": conv_w(ks[3], (n_out, n_out, 3, 3)),
        "gamma2": jax.random.uniform(ks[4], (n_out,), jnp.float32, 0.5, 1.5),
        "beta2": jax.random.uniform(ks[5], (n_out,), jnp.float32, -0.5, 0.5),
    }
    if stride != 1 or n_out != n_in:
        params["wd"] = conv_w(ks[6], (n_out, n_in, 1, 1))
        params["gammad"] = jax.random.uniform(ks[7], (n_out,), jnp.float32, 0.5, 1.5)
        params["betad"] = jax.random.uniform(ks[8], (n_out,), jnp.float32, -0.5, 0.5)
    return params, G


# ----------------------------------------------------------------------------
# Pure-JAX reference (NCHW) for correctness checking.
# ----------------------------------------------------------------------------
def _ref_gn(x, gamma, beta, G, eps=1e-5):
    B, C, H, W = x.shape
    xg = x.reshape(B, G, -1)
    mean = xg.mean(axis=-1, keepdims=True)
    var = ((xg - mean) ** 2).mean(axis=-1, keepdims=True)
    xn = ((xg - mean) / jnp.sqrt(var + eps)).reshape(B, C, H, W)
    return xn * gamma[None, :, None, None] + beta[None, :, None, None]


def ref_forward(x, params, stride, act, G):
    def conv(x, w, s, p):
        return lax.conv_general_dilated(
            x, w, (s, s), [(p, p), (p, p)],
            dimension_numbers=("NCHW", "OIHW", "NCHW"))

    out = conv(x, params["w1"], stride, 1)
    out = jnp.maximum(_ref_gn(out, params["gamma1"], params["beta1"], G), 0.0)
    out = conv(out, params["w2"], 1, 1)
    out = _ref_gn(out, params["gamma2"], params["beta2"], G)
    if "wd" in params:
        skip = conv(x, params["wd"], stride, 0)
        skip = _ref_gn(skip, params["gammad"], params["betad"], G)
    else:
        skip = x
    out = out + skip
    if act:
        out = jnp.maximum(out, 0.0)
    return out


if __name__ == "__main__":
    key = jax.random.PRNGKey(0)
    k1, k2, k3, k4, k5 = jax.random.split(key, 5)
    B, H, W = 2, 16, 16

    # case 1: channel change 4 -> 8 (downsample conv1x1 + GN), stride 1, f32 MXU
    x1 = jax.random.normal(k1, (B, 4, H, W), jnp.float32)
    p1, G1 = postres_init(k2, 4, 8, stride=1, ng=32)
    o1 = jax.block_until_ready(
        postres_forward(x1, p1, stride=1, act=True, num_groups=G1,
                        compute_dtype=jnp.float32))
    r1 = ref_forward(x1, p1, 1, True, G1)
    assert o1.shape == (B, 8, H, W), o1.shape
    e1 = float(jnp.max(jnp.abs(o1 - r1)))
    assert e1 < 2e-2, f"case1 max abs error {e1}"

    # case 2: identity skip (8 -> 8, stride 1), bf16 MXU operands / f32 accum+GN
    x2 = jax.random.normal(k3, (B, 8, H, W), jnp.float32)
    p2, G2 = postres_init(k4, 8, 8, stride=1, ng=32)
    o2 = jax.block_until_ready(
        postres_forward(x2, p2, stride=1, act=True, num_groups=G2,
                        compute_dtype=jnp.bfloat16))
    r2 = ref_forward(x2, p2, 1, True, G2)
    assert o2.shape == (B, 8, H, W), o2.shape
    e2 = float(jnp.max(jnp.abs(o2 - r2)))
    assert e2 < 1.5e-1, f"case2 max abs error {e2}"

    # case 3: stride 2 with downsample branch, f32 MXU
    p3, G3 = postres_init(k5, 4, 8, stride=2, ng=32)
    o3 = jax.block_until_ready(
        postres_forward(x1, p3, stride=2, act=True, num_groups=G3,
                        compute_dtype=jnp.float32))
    r3 = ref_forward(x1, p3, 2, True, G3)
    assert o3.shape == (B, 8, 8, 8), o3.shape
    e3 = float(jnp.max(jnp.abs(o3 - r3)))
    assert e3 < 2e-2, f"case3 max abs error {e3}"

    print("KERNEL_OK")
</pallas_src>

<mosaic_0001>
module attributes {stable_mosaic.version = 11 : i64} {
  func.func @_postres_kernel(%arg0: i32, %arg1: memref<1x8x256xf32, #tpu.memory_space<vmem>>, %arg2: memref<9x256xf32, #tpu.memory_space<vmem>>, %arg3: memref<8x72xf32, #tpu.memory_space<vmem>>, %arg4: memref<8x1xf32, #tpu.memory_space<vmem>>, %arg5: memref<8x1xf32, #tpu.memory_space<vmem>>, %arg6: memref<8x72xf32, #tpu.memory_space<vmem>>, %arg7: memref<8x1xf32, #tpu.memory_space<vmem>>, %arg8: memref<8x1xf32, #tpu.memory_space<vmem>>, %arg9: memref<8x8xf32, #tpu.memory_space<vmem>>, %arg10: memref<8x1xf32, #tpu.memory_space<vmem>>, %arg11: memref<8x1xf32, #tpu.memory_space<vmem>>, %arg12: memref<1x8x256xf32, #tpu.memory_space<vmem>>, %arg13: memref<72x256xf32, #tpu.memory_space<vmem>>) attributes {dimension_semantics = [#tpu.dimension_semantics<parallel>], iteration_bounds = array<i64: 2>, scalar_prefetch = 0 : i64, scratch_operands = 1 : i64, tpu.core_type = #tpu.core_type<tc>, window_params = [{transform_indices = @transform_0, window_bounds = array<i64: 1, 8, 256>}, {pipeline_mode = #tpu.pipeline_mode<synchronous>, transform_indices = @transform_1, window_bounds = array<i64: 9, 256>}, {pipeline_mode = #tpu.pipeline_mode<synchronous>, transform_indices = @transform_2, window_bounds = array<i64: 8, 72>}, {pipeline_mode = #tpu.pipeline_mode<synchronous>, transform_indices = @transform_3, window_bounds = array<i64: 8, 1>}, {pipeline_mode = #tpu.pipeline_mode<synchronous>, transform_indices = @transform_4, window_bounds = array<i64: 8, 1>}, {pipeline_mode = #tpu.pipeline_mode<synchronous>, transform_indices = @transform_5, window_bounds = array<i64: 8, 72>}, {pipeline_mode = #tpu.pipeline_mode<synchronous>, transform_indices = @transform_6, window_bounds = array<i64: 8, 1>}, {pipeline_mode = #tpu.pipeline_mode<synchronous>, transform_indices = @transform_7, window_bounds = array<i64: 8, 1>}, {pipeline_mode = #tpu.pipeline_mode<synchronous>, transform_indices = @transform_8, window_bounds = array<i64: 8, 8>}, {pipeline_mode = #tpu.pipeline_mode<synchronous>, transform_indices = @transform_9, window_bounds = array<i64: 8, 1>}, {pipeline_mode = #tpu.pipeline_mode<synchronous>, transform_indices = @transform_10, window_bounds = array<i64: 8, 1>}, {transform_indices = @transform_11, window_bounds = array<i64: 1, 8, 256>}]} {
    %c0 = arith.constant 0 : index
    %c0_0 = arith.constant 0 : index
    %c0_1 = arith.constant 0 : index
    %0 = vector.load %arg1[%c0, %c0_0, %c0_1] : memref<1x8x256xf32, #tpu.memory_space<vmem>>, vector<1x8x256xf32>
    %1 = vector.shape_cast %0 : vector<1x8x256xf32> to vector<8x256xf32>
    %c17_i32 = arith.constant 17 : i32
    %2 = tpu.dynamic_rotate %1 by %c17_i32 dim 1 : vector<8x256xf32>, i32 -> vector<8x256xf32>
    %c0_2 = arith.constant 0 : index
    %c0_3 = arith.constant 0 : index
    %3 = vector.load %arg2[%c0_2, %c0_3] : memref<9x256xf32, #tpu.memory_space<vmem>>, vector<1x256xf32>
    %4 = vector.broadcast %3 : vector<1x256xf32> to vector<8x256xf32>
    %5 = arith.mulf %2, %4 : vector<8x256xf32>
    %c0_4 = arith.constant 0 : index
    %c0_5 = arith.constant 0 : index
    %6 = vector.load %arg13[%c0_4, %c0_5] : memref<72x256xf32, #tpu.memory_space<vmem>>, vector<8x256xf32>
    tpu.vector_store %arg13[%c0_4, %c0_5], %5 {strides = array<i32>} : memref<72x256xf32, #tpu.memory_space<vmem>>, vector<8x256xf32>,
    %c16_i32 = arith.constant 16 : i32
    %7 = tpu.dynamic_rotate %1 by %c16_i32 dim 1 : vector<8x256xf32>, i32 -> vector<8x256xf32>
    %c1 = arith.constant 1 : index
    %c0_6 = arith.constant 0 : index
    %8 = vector.load %arg2[%c1, %c0_6] : memref<9x256xf32, #tpu.memory_space<vmem>>, vector<1x256xf32>
    %9 = vector.broadcast %8 : vector<1x256xf32> to vector<8x256xf32>
    %10 = arith.mulf %7, %9 : vector<8x256xf32>
    %c8 = arith.constant 8 : index
    %c0_7 = arith.constant 0 : index
    %11 = vector.load %arg13[%c8, %c0_7] : memref<72x256xf32, #tpu.memory_space<vmem>>, vector<8x256xf32>
    tpu.vector_store %arg13[%c8, %c0_7], %10 {strides = array<i32>} : memref<72x256xf32, #tpu.memory_space<vmem>>, vector<8x256xf32>,
    %c15_i32 = arith.constant 15 : i32
    %12 = tpu.dynamic_rotate %1 by %c15_i32 dim 1 : vector<8x256xf32>, i32 -> vector<8x256xf32>
    %c2 = arith.constant 2 : index
    %c0_8 = arith.constant 0 : index
    %13 = vector.load %arg2[%c2, %c0_8] : memref<9x256xf32, #tpu.memory_space<vmem>>, vector<1x256xf32>
    %14 = vector.broadcast %13 : vector<1x256xf32> to vector<8x256xf32>
    %15 = arith.mulf %12, %14 : vector<8x256xf32>
    %c16 = arith.constant 16 : index
    %c0_9 = arith.constant 0 : index
    %16 = vector.load %arg13[%c16, %c0_9] : memref<72x256xf32, #tpu.memory_space<vmem>>, vector<8x256xf32>
    tpu.vector_store %arg13[%c16, %c0_9], %15 {strides = array<i32>} : memref<72x256xf32, #tpu.memory_space<vmem>>, vector<8x256xf32>,
    %c1_i32 = arith.constant 1 : i32
    %17 = tpu.dynamic_rotate %1 by %c1_i32 dim 1 : vector<8x256xf32>, i32 -> vector<8x256xf32>
    %c3 = arith.constant 3 : index
    %c0_10 = arith.constant 0 : index
    %18 = vector.load %arg2[%c3, %c0_10] : memref<9x256xf32, #tpu.memory_space<vmem>>, vector<1x256xf32>
    %19 = vector.broadcast %18 : vector<1x256xf32> to vector<8x256xf32>
    %20 = arith.mulf %17, %19 : vector<8x256xf32>
    %c24 = arith.constant 24 : index
    %c0_11 = arith.constant 0 : index
    %21 = vector.load %arg13[%c24, %c0_11] : memref<72x256xf32, #tpu.memory_space<vmem>>, vector<8x256xf32>
    tpu.vector_store %arg13[%c24, %c0_11], %20 {strides = array<i32>} : memref<72x256xf32, #tpu.memory_space<vmem>>, vector<8x256xf32>,
    %c32 = arith.constant 32 : index
    %c0_12 = arith.constant 0 : index
    %22 = vector.load %arg13[%c32, %c0_12] : memref<72x256xf32, #tpu.memory_space<vmem>>, vector<8x256xf32>
    tpu.vector_store %arg13[%c32, %c0_12], %1 {strides = array<i32>} : memref<72x256xf32, #tpu.memory_space<vmem>>, vector<8x256xf32>,
    %c255_i32 = arith.constant 255 : i32
    %23 = tpu.dynamic_rotate %1 by %c255_i32 dim 1 : vector<8x256xf32>, i32 -> vector<8x256xf32>
    %c5 = arith.constant 5 : index
    %c0_13 = arith.constant 0 : index
    %24 = vector.load %arg2[%c5, %c0_13] : memref<9x256xf32, #tpu.memory_space<vmem>>, vector<1x256xf32>
    %25 = vector.broadcast %24 : vector<1x256xf32> to vector<8x256xf32>
    %26 = arith.mulf %23, %25 : vector<8x256xf32>
    %c40 = arith.constant 40 : index
    %c0_14 = arith.constant 0 : index
    %27 = vector.load %arg13[%c40, %c0_14] : memref<72x256xf32, #tpu.memory_space<vmem>>, vector<8x256xf32>
    tpu.vector_store %arg13[%c40, %c0_14], %26 {strides = array<i32>} : memref<72x256xf32, #tpu.memory_space<vmem>>, vector<8x256xf32>,
    %c241_i32 = arith.constant 241 : i32
    %28 = tpu.dynamic_rotate %1 by %c241_i32 dim 1 : vector<8x256xf32>, i32 -> vector<8x256xf32>
    %c6 = arith.constant 6 : index
    %c0_15 = arith.constant 0 : index
    %29 = vector.load %arg2[%c6, %c0_15] : memref<9x256xf32, #tpu.memory_space<vmem>>, vector<1x256xf32>
    %30 = vector.broadcast %29 : vector<1x256xf32> to vector<8x256xf32>
    %31 = arith.mulf %28, %30 : vector<8x256xf32>
    %c48 = arith.constant 48 : index
    %c0_16 = arith.constant 0 : index
    %32 = vector.load %arg13[%c48, %c0_16] : memref<72x256xf32, #tpu.memory_space<vmem>>, vector<8x256xf32>
    tpu.vector_store %arg13[%c48, %c0_16], %31 {strides = array<i32>} : memref<72x256xf32, #tpu.memory_space<vmem>>, vector<8x256xf32>,
    %c240_i32 = arith.constant 240 : i32
    %33 = tpu.dynamic_rotate %1 by %c240_i32 dim 1 : vector<8x256xf32>, i32 -> vector<8x256xf32>
    %c7 = arith.constant 7 : index
    %c0_17 = arith.constant 0 : index
    %34 = vector.load %arg2[%c7, %c0_17] : memref<9x256xf32, #tpu.memory_space<vmem>>, vector<1x256xf32>
    %35 = vector.broadcast %34 : vector<1x256xf32> to vector<8x256xf32>
    %36 = arith.mulf %33, %35 : vector<8x256xf32>
    %c56 = arith.constant 56 : index
    %c0_18 = arith.constant 0 : index
    %37 = vector.load %arg13[%c56, %c0_18] : memref<72x256xf32, #tpu.memory_space<vmem>>, vector<8x256xf32>
    tpu.vector_store %arg13[%c56, %c0_18], %36 {strides = array<i32>} : memref<72x256xf32, #tpu.memory_space<vmem>>, vector<8x256xf32>,
    %c239_i32 = arith.constant 239 : i32
    %38 = tpu.dynamic_rotate %1 by %c239_i32 dim 1 : vector<8x256xf32>, i32 -> vector<8x256xf32>
    %c8_19 = arith.constant 8 : index
    %c0_20 = arith.constant 0 : index
    %39 = vector.load %arg2[%c8_19, %c0_20] : memref<9x256xf32, #tpu.memory_space<vmem>>, vector<1x256xf32>
    %40 = vector.broadcast %39 : vector<1x256xf32> to vector<8x256xf32>
    %41 = arith.mulf %38, %40 : vector<8x256xf32>
    %c64 = arith.constant 64 : index
    %c0_21 = arith.constant 0 : index
    %42 = vector.load %arg13[%c64, %c0_21] : memref<72x256xf32, #tpu.memory_space<vmem>>, vector<8x256xf32>
    tpu.vector_store %arg13[%c64, %c0_21], %41 {strides = array<i32>} : memref<72x256xf32, #tpu.memory_space<vmem>>, vector<8x256xf32>,
    %c0_22 = arith.constant 0 : index
    %c0_23 = arith.constant 0 : index
    %43 = vector.load %arg3[%c0_22, %c0_23] : memref<8x72xf32, #tpu.memory_space<vmem>>, vector<8x72xf32>
    %c0_24 = arith.constant 0 : index
    %c0_25 = arith.constant 0 : index
    %44 = vector.load %arg13[%c0_24, %c0_25] : memref<72x256xf32, #tpu.memory_space<vmem>>, vector<72x256xf32>
    %cst = arith.constant dense<0.000000e+00> : vector<8x256xf32>
    %45 = tpu.matmul %43, %44, %cst {dimension_numbers = #tpu.dot_dimension_numbers<[1], [0], [0], [1], [0, 0, 1, 1], [], []>} : vector<8x72xf32>, vector<72x256xf32>, vector<8x256xf32> -> vector<8x256xf32>
    %c0_26 = arith.constant 0 : index
    %c0_27 = arith.constant 0 : index
    %46 = vector.load %arg4[%c0_26, %c0_27] : memref<8x1xf32, #tpu.memory_space<vmem>>, vector<8x1xf32>
    %c0_28 = arith.constant 0 : index
    %c0_29 = arith.constant 0 : index
    %47 = vector.load %arg5[%c0_28, %c0_29] : memref<8x1xf32, #tpu.memory_space<vmem>>, vector<8x1xf32>
    %cst_30 = arith.constant dense<0.000000e+00> : vector<8xf32>
    %48 = vector.multi_reduction <add>, %45, %cst_30 [1] : vector<8x256xf32> to vector<8xf32>
    %49 = vector.shape_cast %48 : vector<8xf32> to vector<8x1xf32>
    %50 = arith.mulf %45, %45 : vector<8x256xf32>
    %cst_31 = arith.constant dense<0.000000e+00> : vector<8xf32>
    %51 = vector.multi_reduction <add>, %50, %cst_31 [1] : vector<8x256xf32> to vector<8xf32>
    %52 = vector.shape_cast %51 : vector<8xf32> to vector<8x1xf32>
    %cst_32 = arith.constant 2.560000e+02 : f32
    %53 = vector.broadcast %cst_32 : f32 to vector<8x1xf32>
    %54 = arith.divf %49, %53 : vector<8x1xf32>
    %cst_33 = arith.constant 2.560000e+02 : f32
    %55 = vector.broadcast %cst_33 : f32 to vector<8x1xf32>
    %56 = arith.divf %52, %55 : vector<8x1xf32>
    %57 = arith.mulf %54, %54 : vector<8x1xf32>
    %58 = arith.subf %56, %57 : vector<8x1xf32>
    %cst_34 = arith.constant 0.000000e+00 : f32
    %59 = vector.broadcast %cst_34 : f32 to vector<8x1xf32>
    %60 = arith.maximumf %58, %59 : vector<8x1xf32>
    %61 = vector.broadcast %54 : vector<8x1xf32> to vector<8x256xf32>
    %62 = arith.subf %45, %61 : vector<8x256xf32>
    %cst_35 = arith.constant 9.99999974E-6 : f32
    %63 = vector.broadcast %cst_35 : f32 to vector<8x1xf32>
    %64 = arith.addf %60, %63 : vector<8x1xf32>
    %65 = math.rsqrt %64 : vector<8x1xf32>
    %66 = vector.broadcast %65 : vector<8x1xf32> to vector<8x256xf32>
    %67 = arith.mulf %62, %66 : vector<8x256xf32>
    %68 = vector.broadcast %46 : vector<8x1xf32> to vector<8x256xf32>
    %69 = arith.mulf %67, %68 : vector<8x256xf32>
    %70 = vector.broadcast %47 : vector<8x1xf32> to vector<8x256xf32>
    %71 = arith.addf %69, %70 : vector<8x256xf32>
    %cst_36 = arith.constant 0.000000e+00 : f32
    %72 = vector.broadcast %cst_36 : f32 to vector<8x256xf32>
    %73 = arith.maximumf %71, %72 : vector<8x256xf32>
    %c17_i32_37 = arith.constant 17 : i32
    %74 = tpu.dynamic_rotate %73 by %c17_i32_37 dim 1 : vector<8x256xf32>, i32 -> vector<8x256xf32>
    %c0_38 = arith.constant 0 : index
    %c0_39 = arith.constant 0 : index
    %75 = vector.load %arg2[%c0_38, %c0_39] : memref<9x256xf32, #tpu.memory_space<vmem>>, vector<1x256xf32>
    %76 = vector.broadcast %75 : vector<1x256xf32> to vector<8x256xf32>
    %77 = arith.mulf %74, %76 : vector<8x256xf32>
    %c0_40 = arith.constant 0 : index
    %c0_41 = arith.constant 0 : index
    %78 = vector.load %arg13[%c0_40, %c0_41] : memref<72x256xf32, #tpu.memory_space<vmem>>, vector<8x256xf32>
    tpu.vector_store %arg13[%c0_40, %c0_41], %77 {strides = array<i32>} : memref<72x256xf32, #tpu.memory_space<vmem>>, vector<8x256xf32>,
    %c16_i32_42 = arith.constant 16 : i32
    %79 = tpu.dynamic_rotate %73 by %c16_i32_42 dim 1 : vector<8x256xf32>, i32 -> vector<8x256xf32>
    %c1_43 = arith.constant 1 : index
    %c0_44 = arith.constant 0 : index
    %80 = vector.load %arg2[%c1_43, %c0_44] : memref<9x256xf32, #tpu.memory_space<vmem>>, vector<1x256xf32>
    %81 = vector.broadcast %80 : vector<1x256xf32> to vector<8x256xf32>
    %82 = arith.mulf %79, %81 : vector<8x256xf32>
    %c8_45 = arith.constant 8 : index
    %c0_46 = arith.constant 0 : index
    %83 = vector.load %arg13[%c8_45, %c0_46] : memref<72x256xf32, #tpu.memory_space<vmem>>, vector<8x256xf32>
    tpu.vector_store %arg13[%c8_45, %c0_46], %82 {strides = array<i32>} : memref<72x256xf32, #tpu.memory_space<vmem>>, vector<8x256xf32>,
    %c15_i32_47 = arith.constant 15 : i32
    %84 = tpu.dynamic_rotate %73 by %c15_i32_47 dim 1 : vector<8x256xf32>, i32 -> vector<8x256xf32>
    %c2_48 = arith.constant 2 : index
    %c0_49 = arith.constant 0 : index
    %85 = vector.load %arg2[%c2_48, %c0_49] : memref<9x256xf32, #tpu.memory_space<vmem>>, vector<1x256xf32>
    %86 = vector.broadcast %85 : vector<1x256xf32> to vector<8x256xf32>
    %87 = arith.mulf %84, %86 : vector<8x256xf32>
    %c16_50 = arith.constant 16 : index
    %c0_51 = arith.constant 0 : index
    %88 = vector.load %arg13[%c16_50, %c0_51] : memref<72x256xf32, #tpu.memory_space<vmem>>, vector<8x256xf32>
    tpu.vector_store %arg13[%c16_50, %c0_51], %87 {strides = array<i32>} : memref<72x256xf32, #tpu.memory_space<vmem>>, vector<8x256xf32>,
    %c1_i32_52 = arith.constant 1 : i32
    %89 = tpu.dynamic_rotate %73 by %c1_i32_52 dim 1 : vector<8x256xf32>, i32 -> vector<8x256xf32>
    %c3_53 = arith.constant 3 : index
    %c0_54 = arith.constant 0 : index
    %90 = vector.load %arg2[%c3_53, %c0_54] : memref<9x256xf32, #tpu.memory_space<vmem>>, vector<1x256xf32>
    %91 = vector.broadcast %90 : vector<1x256xf32> to vector<8x256xf32>
    %92 = arith.mulf %89, %91 : vector<8x256xf32>
    %c24_55 = arith.constant 24 : index
    %c0_56 = arith.constant 0 : index
    %93 = vector.load %arg13[%c24_55, %c0_56] : memref<72x256xf32, #tpu.memory_space<vmem>>, vector<8x256xf32>
    tpu.vector_store %arg13[%c24_55, %c0_56], %92 {strides = array<i32>} : memref<72x256xf32, #tpu.memory_space<vmem>>, vector<8x256xf32>,
    %c32_57 = arith.constant 32 : index
    %c0_58 = arith.constant 0 : index
    %94 = vector.load %arg13[%c32_57, %c0_58] : memref<72x256xf32, #tpu.memory_space<vmem>>, vector<8x256xf32>
    tpu.vector_store %arg13[%c32_57, %c0_58], %73 {strides = array<i32>} : memref<72x256xf32, #tpu.memory_space<vmem>>, vector<8x256xf32>,
    %c255_i32_59 = arith.constant 255 : i32
    %95 = tpu.dynamic_rotate %73 by %c255_i32_59 dim 1 : vector<8x256xf32>, i32 -> vector<8x256xf32>
    %c5_60 = arith.constant 5 : index
    %c0_61 = arith.constant 0 : index
    %96 = vector.load %arg2[%c5_60, %c0_61] : memref<9x256xf32, #tpu.memory_space<vmem>>, vector<1x256xf32>
    %97 = vector.broadcast %96 : vector<1x256xf32> to vector<8x256xf32>
    %98 = arith.mulf %95, %97 : vector<8x256xf32>
    %c40_62 = arith.constant 40 : index
    %c0_63 = arith.constant 0 : index
    %99 = vector.load %arg13[%c40_62, %c0_63] : memref<72x256xf32, #tpu.memory_space<vmem>>, vector<8x256xf32>
    tpu.vector_store %arg13[%c40_62, %c0_63], %98 {strides = array<i32>} : memref<72x256xf32, #tpu.memory_space<vmem>>, vector<8x256xf32>,
    %c241_i32_64 = arith.constant 241 : i32
    %100 = tpu.dynamic_rotate %73 by %c241_i32_64 dim 1 : vector<8x256xf32>, i32 -> vector<8x256xf32>
    %c6_65 = arith.constant 6 : index
    %c0_66 = arith.constant 0 : index
    %101 = vector.load %arg2[%c6_65, %c0_66] : memref<9x256xf32, #tpu.memory_space<vmem>>, vector<1x256xf32>
    %102 = vector.broadcast %101 : vector<1x256xf32> to vector<8x256xf32>
    %103 = arith.mulf %100, %102 : vector<8x256xf32>
    %c48_67 = arith.constant 48 : index
    %c0_68 = arith.constant 0 : index
    %104 = vector.load %arg13[%c48_67, %c0_68] : memref<72x256xf32, #tpu.memory_space<vmem>>, vector<8x256xf32>
    tpu.vector_store %arg13[%c48_67, %c0_68], %103 {strides = array<i32>} : memref<72x256xf32, #tpu.memory_space<vmem>>, vector<8x256xf32>,
    %c240_i32_69 = arith.constant 240 : i32
    %105 = tpu.dynamic_rotate %73 by %c240_i32_69 dim 1 : vector<8x256xf32>, i32 -> vector<8x256xf32>
    %c7_70 = arith.constant 7 : index
    %c0_71 = arith.constant 0 : index
    %106 = vector.load %arg2[%c7_70, %c0_71] : memref<9x256xf32, #tpu.memory_space<vmem>>, vector<1x256xf32>
    %107 = vector.broadcast %106 : vector<1x256xf32> to vector<8x256xf32>
    %108 = arith.mulf %105, %107 : vector<8x256xf32>
    %c56_72 = arith.constant 56 : index
    %c0_73 = arith.constant 0 : index
    %109 = vector.load %arg13[%c56_72, %c0_73] : memref<72x256xf32, #tpu.memory_space<vmem>>, vector<8x256xf32>
    tpu.vector_store %arg13[%c56_72, %c0_73], %108 {strides = array<i32>} : memref<72x256xf32, #tpu.memory_space<vmem>>, vector<8x256xf32>,
    %c239_i32_74 = arith.constant 239 : i32
    %110 = tpu.dynamic_rotate %73 by %c239_i32_74 dim 1 : vector<8x256xf32>, i32 -> vector<8x256xf32>
    %c8_75 = arith.constant 8 : index
    %c0_76 = arith.constant 0 : index
    %111 = vector.load %arg2[%c8_75, %c0_76] : memref<9x256xf32, #tpu.memory_space<vmem>>, vector<1x256xf32>
    %112 = vector.broadcast %111 : vector<1x256xf32> to vector<8x256xf32>
    %113 = arith.mulf %110, %112 : vector<8x256xf32>
    %c64_77 = arith.constant 64 : index
    %c0_78 = arith.constant 0 : index
    %114 = vector.load %arg13[%c64_77, %c0_78] : memref<72x256xf32, #tpu.memory_space<vmem>>, vector<8x256xf32>
    tpu.vector_store %arg13[%c64_77, %c0_78], %113 {strides = array<i32>} : memref<72x256xf32, #tpu.memory_space<vmem>>, vector<8x256xf32>,
    %c0_79 = arith.constant 0 : index
    %c0_80 = arith.constant 0 : index
    %115 = vector.load %arg6[%c0_79, %c0_80] : memref<8x72xf32, #tpu.memory_space<vmem>>, vector<8x72xf32>
    %c0_81 = arith.constant 0 : index
    %c0_82 = arith.constant 0 : index
    %116 = vector.load %arg13[%c0_81, %c0_82] : memref<72x256xf32, #tpu.memory_space<vmem>>, vector<72x256xf32>
    %cst_83 = arith.constant dense<0.000000e+00> : vector<8x256xf32>
    %117 = tpu.matmul %115, %116, %cst_83 {dimension_numbers = #tpu.dot_dimension_numbers<[1], [0], [0], [1], [0, 0, 1, 1], [], []>} : vector<8x72xf32>, vector<72x256xf32>, vector<8x256xf32> -> vector<8x256xf32>
    %c0_84 = arith.constant 0 : index
    %c0_85 = arith.constant 0 : index
    %118 = vector.load %arg7[%c0_84, %c0_85] : memref<8x1xf32, #tpu.memory_space<vmem>>, vector<8x1xf32>
    %c0_86 = arith.constant 0 : index
    %c0_87 = arith.constant 0 : index
    %119 = vector.load %arg8[%c0_86, %c0_87] : memref<8x1xf32, #tpu.memory_space<vmem>>, vector<8x1xf32>
    %cst_88 = arith.constant dense<0.000000e+00> : vector<8xf32>
    %120 = vector.multi_reduction <add>, %117, %cst_88 [1] : vector<8x256xf32> to vector<8xf32>
    %121 = vector.shape_cast %120 : vector<8xf32> to vector<8x1xf32>
    %122 = arith.mulf %117, %117 : vector<8x256xf32>
    %cst_89 = arith.constant dense<0.000000e+00> : vector<8xf32>
    %123 = vector.multi_reduction <add>, %122, %cst_89 [1] : vector<8x256xf32> to vector<8xf32>
    %124 = vector.shape_cast %123 : vector<8xf32> to vector<8x1xf32>
    %cst_90 = arith.constant 2.560000e+02 : f32
    %125 = vector.broadcast %cst_90 : f32 to vector<8x1xf32>
    %126 = arith.divf %121, %125 : vector<8x1xf32>
    %cst_91 = arith.constant 2.560000e+02 : f32
    %127 = vector.broadcast %cst_91 : f32 to vector<8x1xf32>
    %128 = arith.divf %124, %127 : vector<8x1xf32>
    %129 = arith.mulf %126, %126 : vector<8x1xf32>
    %130 = arith.subf %128, %129 : vector<8x1xf32>
    %cst_92 = arith.constant 0.000000e+00 : f32
    %131 = vector.broadcast %cst_92 : f32 to vector<8x1xf32>
    %132 = arith.maximumf %130, %131 : vector<8x1xf32>
    %133 = vector.broadcast %126 : vector<8x1xf32> to vector<8x256xf32>
    %134 = arith.subf %117, %133 : vector<8x256xf32>
    %cst_93 = arith.constant 9.99999974E-6 : f32
    %135 = vector.broadcast %cst_93 : f32 to vector<8x1xf32>
    %136 = arith.addf %132, %135 : vector<8x1xf32>
    %137 = math.rsqrt %136 : vector<8x1xf32>
    %138 = vector.broadcast %137 : vector<8x1xf32> to vector<8x256xf32>
    %139 = arith.mulf %134, %138 : vector<8x256xf32>
    %140 = vector.broadcast %118 : vector<8x1xf32> to vector<8x256xf32>
    %141 = arith.mulf %139, %140 : vector<8x256xf32>
    %142 = vector.broadcast %119 : vector<8x1xf32> to vector<8x256xf32>
    %143 = arith.addf %141, %142 : vector<8x256xf32>
    %c0_94 = arith.constant 0 : index
    %c0_95 = arith.constant 0 : index
    %144 = vector.load %arg9[%c0_94, %c0_95] : memref<8x8xf32, #tpu.memory_space<vmem>>, vector<8x8xf32>
    %cst_96 = arith.constant dense<0.000000e+00> : vector<8x256xf32>
    %145 = tpu.matmul %144, %1, %cst_96 {dimension_numbers = #tpu.dot_dimension_numbers<[1], [0], [0], [1], [0, 0, 1, 1], [], []>} : vector<8x8xf32>, vector<8x256xf32>, vector<8x256xf32> -> vector<8x256xf32>
    %c0_97 = arith.constant 0 : index
    %c0_98 = arith.constant 0 : index
    %146 = vector.load %arg10[%c0_97, %c0_98] : memref<8x1xf32, #tpu.memory_space<vmem>>, vector<8x1xf32>
    %c0_99 = arith.constant 0 : index
    %c0_100 = arith.constant 0 : index
    %147 = vector.load %arg11[%c0_99, %c0_100] : memref<8x1xf32, #tpu.memory_space<vmem>>, vector<8x1xf32>
    %cst_101 = arith.constant dense<0.000000e+00> : vector<8xf32>
    %148 = vector.multi_reduction <add>, %145, %cst_101 [1] : vector<8x256xf32> to vector<8xf32>
    %149 = vector.shape_cast %148 : vector<8xf32> to vector<8x1xf32>
    %150 = arith.mulf %145, %145 : vector<8x256xf32>
    %cst_102 = arith.constant dense<0.000000e+00> : vector<8xf32>
    %151 = vector.multi_reduction <add>, %150, %cst_102 [1] : vector<8x256xf32> to vector<8xf32>
    %152 = vector.shape_cast %151 : vector<8xf32> to vector<8x1xf32>
    %cst_103 = arith.constant 2.560000e+02 : f32
    %153 = vector.broadcast %cst_103 : f32 to vector<8x1xf32>
    %154 = arith.divf %149, %153 : vector<8x1xf32>
    %cst_104 = arith.constant 2.560000e+02 : f32
    %155 = vector.broadcast %cst_104 : f32 to vector<8x1xf32>
    %156 = arith.divf %152, %155 : vector<8x1xf32>
    %157 = arith.mulf %154, %154 : vector<8x1xf32>
    %158 = arith.subf %156, %157 : vector<8x1xf32>
    %cst_105 = arith.constant 0.000000e+00 : f32
    %159 = vector.broadcast %cst_105 : f32 to vector<8x1xf32>
    %160 = arith.maximumf %158, %159 : vector<8x1xf32>
    %161 = vector.broadcast %154 : vector<8x1xf32> to vector<8x256xf32>
    %162 = arith.subf %145, %161 : vector<8x256xf32>
    %cst_106 = arith.constant 9.99999974E-6 : f32
    %163 = vector.broadcast %cst_106 : f32 to vector<8x1xf32>
    %164 = arith.addf %160, %163 : vector<8x1xf32>
    %165 = math.rsqrt %164 : vector<8x1xf32>
    %166 = vector.broadcast %165 : vector<8x1xf32> to vector<8x256xf32>
    %167 = arith.mulf %162, %166 : vector<8x256xf32>
    %168 = vector.broadcast %146 : vector<8x1xf32> to vector<8x256xf32>
    %169 = arith.mulf %167, %168 : vector<8x256xf32>
    %170 = vector.broadcast %147 : vector<8x1xf32> to vector<8x256xf32>
    %171 = arith.addf %169, %170 : vector<8x256xf32>
    %172 = arith.addf %143, %171 : vector<8x256xf32>
    %cst_107 = arith.constant 0.000000e+00 : f32
    %173 = vector.broadcast %cst_107 : f32 to vector<8x256xf32>
    %174 = arith.maximumf %172, %173 : vector<8x256xf32>
    %c0_108 = arith.constant 0 : index
    %c0_109 = arith.constant 0 : index
    %c0_110 = arith.constant 0 : index
    %175 = vector.load %arg12[%c0_108, %c0_109, %c0_110] : memref<1x8x256xf32, #tpu.memory_space<vmem>>, vector<1x8x256xf32>
    %176 = vector.shape_cast %175 : vector<1x8x256xf32> to vector<8x256xf32>
    %177 = vector.shape_cast %174 : vector<8x256xf32> to vector<1x8x256xf32>
    tpu.vector_store %arg12[%c0_108, %c0_109, %c0_110], %177 {strides = array<i32>} : memref<1x8x256xf32, #tpu.memory_space<vmem>>, vector<1x8x256xf32>,
    return
  }
  func.func @transform_0(%arg0: i32) -> (i32, i32, i32) {
    %c0_i32 = arith.constant 0 : i32
    %c0_i32_0 = arith.constant 0 : i32
    %c0_i32_1 = arith.constant 0 : i32
    return %arg0, %c0_i32, %c0_i32_0 : i32, i32, i32
  }
  func.func @transform_1(%arg0: i32) -> (i32, i32) {
    %c0_i32 = arith.constant 0 : i32
    %c0_i32_0 = arith.constant 0 : i32
    %c0_i32_1 = arith.constant 0 : i32
    return %c0_i32, %c0_i32_0 : i32, i32
  }
  func.func @transform_2(%arg0: i32) -> (i32, i32) {
    %c0_i32 = arith.constant 0 : i32
    %c0_i32_0 = arith.constant 0 : i32
    %c0_i32_1 = arith.constant 0 : i32
    return %c0_i32, %c0_i32_0 : i32, i32
  }
  func.func @transform_3(%arg0: i32) -> (i32, i32) {
    %c0_i32 = arith.constant 0 : i32
    %c0_i32_0 = arith.constant 0 : i32
    %c0_i32_1 = arith.constant 0 : i32
    return %c0_i32, %c0_i32_0 : i32, i32
  }
  func.func @transform_4(%arg0: i32) -> (i32, i32) {
    %c0_i32 = arith.constant 0 : i32
    %c0_i32_0 = arith.constant 0 : i32
    %c0_i32_1 = arith.constant 0 : i32
    return %c0_i32, %c0_i32_0 : i32, i32
  }
  func.func @transform_5(%arg0: i32) -> (i32, i32) {
    %c0_i32 = arith.constant 0 : i32
    %c0_i32_0 = arith.constant 0 : i32
    %c0_i32_1 = arith.constant 0 : i32
    return %c0_i32, %c0_i32_0 : i32, i32
  }
  func.func @transform_6(%arg0: i32) -> (i32, i32) {
    %c0_i32 = arith.constant 0 : i32
    %c0_i32_0 = arith.constant 0 : i32
    %c0_i32_1 = arith.constant 0 : i32
    return %c0_i32, %c0_i32_0 : i32, i32
  }
  func.func @transform_7(%arg0: i32) -> (i32, i32) {
    %c0_i32 = arith.constant 0 : i32
    %c0_i32_0 = arith.constant 0 : i32
    %c0_i32_1 = arith.constant 0 : i32
    return %c0_i32, %c0_i32_0 : i32, i32
  }
  func.func @transform_8(%arg0: i32) -> (i32, i32) {
    %c0_i32 = arith.constant 0 : i32
    %c0_i32_0 = arith.constant 0 : i32
    %c0_i32_1 = arith.constant 0 : i32
    return %c0_i32, %c0_i32_0 : i32, i32
  }
  func.func @transform_9(%arg0: i32) -> (i32, i32) {
    %c0_i32 = arith.constant 0 : i32
    %c0_i32_0 = arith.constant 0 : i32
    %c0_i32_1 = arith.constant 0 : i32
    return %c0_i32, %c0_i32_0 : i32, i32
  }
  func.func @transform_10(%arg0: i32) -> (i32, i32) {
    %c0_i32 = arith.constant 0 : i32
    %c0_i32_0 = arith.constant 0 : i32
    %c0_i32_1 = arith.constant 0 : i32
    return %c0_i32, %c0_i32_0 : i32, i32
  }
  func.func @transform_11(%arg0: i32) -> (i32, i32, i32) {
    %c0_i32 = arith.constant 0 : i32
    %c0_i32_0 = arith.constant 0 : i32
    %c0_i32_1 = arith.constant 0 : i32
    return %arg0, %c0_i32, %c0_i32_0 : i32, i32, i32
  }
}

</mosaic_0001>

<bundles_post_ra>
// kernel: tpu_custom_call.1
= control target key start
LH: loop header
LB: loop body
LE: loop exit
PB: predicated region body
PF: predicated region fallthrough
CT: control target
= control target key end

     0   :  { %16 = vsyncpa [#allocation4], 0  ;;  %s1900_s0 = inlined_call_operand.vmem [shape: f32[2,8,256], index: 0, kind: input, shape index: {}]   ;;  %s1901_s1 = inlined_call_operand.hbm [shape: f32[9,256], index: 1, kind: input, shape index: {}]   ;;  %s1902_s2 = inlined_call_operand.vmem [shape: f32[8,72], index: 2, kind: input, shape index: {}]   ;;  %s1903_s3 = inlined_call_operand.vmem [shape: f32[8,1], index: 3, kind: input, shape index: {}]   ;;  %s1904_s4 = inlined_call_operand.vmem [shape: f32[8,1], index: 4, kind: input, shape index: {}]   ;;  %s1905_s5 = inlined_call_operand.vmem [shape: f32[8,72], index: 5, kind: input, shape index: {}]   ;;  %s1906_s6 = inlined_call_operand.vmem [shape: f32[8,1], index: 6, kind: input, shape index: {}]   ;;  %s1907_s7 = inlined_call_operand.vmem [shape: f32[8,1], index: 7, kind: input, shape index: {}]   ;;  %s1908_s8 = inlined_call_operand.vmem [shape: f32[8,8], index: 8, kind: input, shape index: {}]   ;;  %s1909_s9 = inlined_call_operand.vmem [shape: f32[8,1], index: 9, kind: input, shape index: {}]   ;;  %s1910_s10 = inlined_call_operand.vmem [shape: f32[8,1], index: 10, kind: input, shape index: {}]   ;;  %s1911_s11 = inlined_call_operand.hbm [shape: f32[2,8,256], index: 11, kind: output, shape index: {}]  }
   0x1   :  { %17 = vsyncpa [#allocation5], 0 }
   0x2   :  { %19 = vsyncpa [#allocation5 + $0x1], 0  ;;  %s1529_s17 = smov 0   ;;  %s1531_s18 = smov 0  }
   0x3   :  { %s1533_s19 = smov 0   ;;  %s1535_s20 = smov 0  }
   0x4 LB: > { %s1550_s21 = sadd.s32 4294967295, %s1453_s20   ;;  %s1238_s22 = sadd.s32 4294967294, %s1453_s20   ;;  %s1453_s20 = sphi %s1535_s20, %s1935_s20   ;;  %s1449_s19 = sphi %s1533_s19, %s1934_s19   ;;  %s1445_s18 = sphi %s1531_s18, %s1933_s18   ;;  %s1441_s17 = sphi %s1529_s17, %s1932_s17  }
   0x5   : > { %s1554_s23 = sadd.s32 1, %s1453_s20   ;;  %s268_s24 = sadd.s32 1, %s1449_s19 }
   0x6   : > { %s265_s25 = ssub.s32 %s1453_s20, %s1554_s23  ;;  %p278_p0 = scmp.ne.s32.totalorder %s1449_s19, %s1445_s18 }
   0x7   : > { %p266_p1 = scmp.eq.s32.totalorder %s265_s25, 0  ;;  %p279_p2 = scmp.eq.s32.totalorder %s1550_s21, 1 }
   0x8   : > { %p284_p3 = scmp.ne.s32.totalorder %s1445_s18, %s1441_s17  ;;  %p285_p4 = scmp.eq.s32.totalorder %s1238_s22, 1 }
   0x9   : > { %s1565_s26 = scalar_select %p266_p1, %s1449_s19, %s268_s24  }
   0xa   : > { %p1567_p5 = por %p279_p2, %p278_p0  ;;  %p1571_p6 = por %p285_p4, %p284_p3 }
   0xb   : > { %1919 = sst [smem:[#allocation9_spill]] %s1565_s26  ;;  %p1239_p7 = scmp.ge.s32.totalorder %s1453_s20, 1 }
   0xc   : > { %s1920_s27 = scalar_select %p1567_p5, 1, 0 }
   0xd   : > { %s1921_s28 = scalar_select %p1571_p6, 1, 0 }
   0xe   : > { %p292_p8 = scmp.lt.s32.totalorder %s1453_s20, 3  ;;  %p1912_p9 = scmp.eq.s32.totalorder %s1550_s21, 0 }
   0xf   : > { %s1455_s30 = smov [#allocation3]   ;;  %s1359_s16 = scalar_lea.hbm %s1901_s1, 512 }
  0x10   : > { %p1578_p10 = pnand %p1239_p7, %p292_p8  ;;  %s304_s12 = sshll.u32 %s1455_s30, 4  ;;  %s305_s12 = int_to_ptr.vmem [resolvable:$true] %s304_s12 }
  0x11   : > { %p1360_p13 = scmp.ne.s32.totalorder %s1901_s1, %s1359_s16  ;;  %p1366_p3 = scmp.lt.u32.totalorder %s1359_s16, %s1901_s1 }
  0x12   : > { %s1922_s29 = scalar_select %p1578_p10, 1, 0 }
  0x13   : > { %p1295_p11 = pneg %p1578_p10 }
  0x15   : > { %p1586_p12 = pnand %p1912_p9, %p1295_p11 }
  0x17   : > { %p1361_p0 = pneg %p1586_p12 }
  0x19   : > { %p1362_p1 = pnand %p1361_p0, %p1360_p13 }
  0x1b   : > { %p1363_p2 = pneg %p1362_p1 }
  0x1d   : > { %p1368_p4 = pnand %p1366_p3, %p1363_p2 }
  0x1f   : > { %1371 = shalt.err (!%p1368_p4)
}
  0x20   : > { %s1372_s26 = scalar_lea.vmem %s305_s12, 512  ;;  %p1380_p9 = scmp.lt.s32.totalorder %s305_s12, %s305_s12 }
  0x21   : > { %p1373_p7 = scmp.ne.s32.totalorder %s305_s12, %s1372_s26  ;;  %p1381_p6 = scmp.lt.s32.totalorder %s1372_s26, %s1372_s26 }
  0x23   : > { %p1375_p8 = pnand %p1373_p7, %p1361_p0  ;;  %p1382_p5 = por %p1381_p6, %p1380_p9 }
  0x25   : > { %p1376_p11 = pneg %p1375_p8 }
  0x27   : > { %p1383_p10 = pnand %p1382_p5, %p1376_p11 }
  0x29   : > { %1386 = shalt.err (!%p1383_p10)
}
  0x2a   : > { %s1456_s14 = smov 256   ;;  %s1457_s15 = smov 16  }
  0x2b   : > { %1298 = dma.hbm_to_vmem [thread:$0]  (!%p1586_p12), %s1901_s1, 512, %s305_s12, [#allocation4], %s1456_s14, %s1456_s14, %s1457_s15  }
  0x2c   : > { %p1924_p13 = scmp.ne.s32.totalorder %s1922_s29, 0 }
  0x2d   : > { %p1925_p1 = scmp.eq.s32.totalorder (!%p1924_p13), %s1550_s21, 0 }
  0x2e   : > { %355 = sbr.rel (%p1924_p13) target bundleno = 1163 (0x48b), region = 64 }
  0x35   : > { %1432 = dma.done.wait (%p1925_p1), [#allocation4], 512   ;;  %p1926_p0 = pmov %p1925_p1 }
  0x36   : > { %p395_p5 = scmp.lt.s32.totalorder %s1550_s21, 1  ;;  %s1458_s12 = smov 16   ;;  %v1464_v2 = vmov 0.0   ;;  %v406_v3 = vlaneseq  ;;  %v435_v8 = vld [vmem:[#allocation3 + $0x1] ss:$8 sm:$0x3] }
  0x37   : > { %1434 = vsyncadd (%p1926_p0), [#allocation4], 4294966784  ;;  %s1459_s29 = smov 17   ;;  %s1915_s14 = smov 15   ;;  %684 = vmatprep.mubr.f32.mxu0 %v1464_v2  ;;  %993 = vmatprep.mubr.f32.mxu1 %v1464_v2  ;;  %vm616_vm8 = vcmask 588800   ;;  %vm1036_vm9 = vcmask 64512  }
  0x38   : > { %s396_s26 = scalar_select %p395_p5, %s1550_s21, 1  ;;  %v414_v4 = vshrl.u32 %v406_v3, 7  ;;  %v1655_v5 = vand.u32 127, %v406_v3  ;;  %v411_v9 = vld [vmem:[#allocation3] ss:$8 sm:$0x3] }
  0x39   : > { %s1461_s15 = smov 1   ;;  %s1462_s22 = smov 127   ;;  %v459_v26 = vld [vmem:[#allocation3 + $0x2] ss:$8 sm:$0x3] }
  0x3a   : > { %s1255_s16 = sshll.u32 %s396_s26, 4  ;;  %s1463_s24 = smov 113   ;;  %v1657_v6 = vsub.s32 0, %v414_v4  ;;  %v1659_v7 = vsub.s32 1, %v414_v4  ;;  %vm431_vm0 = vcmp.lt.s32.totalorder %v1655_v5, 16  ;;  %vm408_vm1 = vcmp.lt.s32.totalorder %v1655_v5, 17 }
  0x3b   : > { %s399_s30 = scalar_lea.vmem %s1900_s0, %s1255_s16  ;;  %s1465_s26 = smov 112   ;;  %v483_v27 = vld [vmem:[#allocation3 + $0x3] ss:$8 sm:$0x3]  ;;  %vm455_vm2 = vcmp.lt.s32.totalorder %v1655_v5, 15  ;;  %vm479_vm3 = vcmp.lt.s32.totalorder %v1655_v5, 1 }
  0x3c   : > { %v1617_v0 = vld [vmem:[%s399_s30] sm:$0xff]  ;;  %v1623_v1 = vld [vmem:[%s399_s30 + $0x8] sm:$0xff]  ;;  %s1917_s16 = smov 111   ;;  %v440_v12 = vrot.slane %v435_v8, %v1657_v6  ;;  %v416_v13 = vrot.slane %v411_v9, %v1657_v6  ;;  %v420_v14 = vrot.slane %v411_v9, %v1659_v7  ;;  %v444_v15 = vrot.slane %v435_v8, %v1659_v7  ;;  %v581_v9 = vld [vmem:[#allocation3 + $0x10] ss:$8 sm:$0x3] }
  0x3d   : > { %427 = vrot.lane.b32.xlu1 %v1617_v0, %s1458_s12  ;;  %402 = vrot.lane.b32.xlu0 %v1617_v0, %s1459_s29  ;;  %v464_v32 = vrot.slane %v459_v26, %v1657_v6  ;;  %v468_v33 = vrot.slane %v459_v26, %v1659_v7  ;;  %v488_v34 = vrot.slane %v483_v27, %v1657_v6  ;;  %v509_v36 = vld [vmem:[#allocation3 + $0x5] ss:$8 sm:$0x3]  ;;  %vm505_vm4 = vcmp.lt.s32.totalorder %v1655_v5, 127  ;;  %s1928_s30 = smov 15   ;;  %p1929_p9 = scmp.ne.s32.totalorder %s1920_s27, 0 }
  0x3e   : > { %v492_v35 = vrot.slane %v483_v27, %v1659_v7  ;;  %v514_v43 = vrot.slane %v509_v36, %v1657_v6  ;;  %v518_v44 = vrot.slane %v509_v36, %v1659_v7  ;;  %v533_v57 = vld [vmem:[#allocation3 + $0x6] ss:$8 sm:$0x3]  ;;  %v557_v58 = vld [vmem:[#allocation3 + $0x7] ss:$8 sm:$0x3] }
  0x3f   : > { %vm529_vm5 = vcmp.lt.s32.totalorder %v1655_v5, 113  ;;  %v538_v63 = vrot.slane %v533_v57, %v1657_v6  ;;  %v542_v3 = vrot.slane %v533_v57, %v1659_v7  ;;  %vm553_vm6 = vcmp.lt.s32.totalorder %v1655_v5, 112 }
  0x40   : > { %v562_v4 = vrot.slane %v557_v58, %v1657_v6  ;;  %v566_v8 = vrot.slane %v557_v58, %v1659_v7  ;;  %vm577_vm7 = vcmp.lt.s32.totalorder %v1655_v5, 111 }
  0x41   : > { %429 = vrot.lane.b32.xlu1 %v1623_v1, %s1458_s12  ;;  %404 = vrot.lane.b32.xlu0 %v1623_v1, %s1459_s29 }
  0x45   : > { %453 = vrot.lane.b32.xlu1 %v1623_v1, %s1915_s14  ;;  %451 = vrot.lane.b32.xlu0 %v1617_v0, %s1915_s14  ;;  %s1468_s14 = smov [#allocation6]  }
  0x49   : > { %477 = vrot.lane.b32.xlu1 %v1623_v1, %s1461_s15  ;;  %475 = vrot.lane.b32.xlu0 %v1617_v0, %s1461_s15 }
  0x4d   : > { %503 = vrot.lane.b32.xlu1 %v1623_v1, %s1462_s22  ;;  %501 = vrot.lane.b32.xlu0 %v1617_v0, %s1462_s22 }
  0x51   : > { %527 = vrot.lane.b32.xlu1 %v1623_v1, %s1463_s24  ;;  %525 = vrot.lane.b32.xlu0 %v1617_v0, %s1463_s24 }
  0x55   : > { %551 = vrot.lane.b32.xlu1 %v1623_v1, %s1465_s26  ;;  %549 = vrot.lane.b32.xlu0 %v1617_v0, %s1465_s26 }
  0x59   : > { %575 = vrot.lane.b32.xlu1 %v1623_v1, %s1917_s16  ;;  %573 = vrot.lane.b32.xlu0 %v1617_v0, %s1917_s16  ;;  %s1927_s16 = smov 111  }
  0xaf   : > { %v428_v10 = vpop.permute.xlu1 %427  ;;  %v403_v11 = vpop.permute.xlu0 %402 }
  0xb3   : > { %v430_v16 = vpop.permute.xlu1 %429  ;;  %v405_v17 = vpop.permute.xlu0 %404 }
  0xb4   : > { %v432_v18 = vsel %vm431_vm0, %v428_v10, %v430_v16  ;;  %v433_v19 = vsel %vm431_vm0, %v430_v16, %v428_v10  ;;  %v409_v20 = vsel %vm408_vm1, %v403_v11, %v405_v17  ;;  %v410_v21 = vsel %vm408_vm1, %v405_v17, %v403_v11 }
  0xb5   : > { %v447_v22 = vmul.f32 %v440_v12, %v433_v19  ;;  %v423_v23 = vmul.f32 %v416_v13, %v410_v21  ;;  %v424_v24 = vmul.f32 %v420_v14, %v409_v20  ;;  %v448_v25 = vmul.f32 %v444_v15, %v432_v18 }
  0xb6   : > { %v590_v16 = vrot.slane %v581_v9, %v1659_v7  ;;  %v586_v21 = vrot.slane %v581_v9, %v1657_v6  ;;  %v1112_v9 = vld [vmem:[%s1910_s10] sm:$0xff] }
  0xb7   : > { %v454_v28 = vpop.permute.xlu1 %453  ;;  %v452_v29 = vpop.permute.xlu0 %451  ;;  %v1257_v30 = vpack.c.bf16 %v448_v25, %v424_v24  ;;  %v1259_v31 = vpack.c.bf16 %v447_v22, %v423_v23 }
  0xb8   : > { %v456_v37 = vsel %vm455_vm2, %v452_v29, %v454_v28  ;;  %v457_v38 = vsel %vm455_vm2, %v454_v28, %v452_v29 }
  0xb9   : > { %1258 = vmatprep.subr.bf16.mxu0 %v1257_v30  ;;  %v471_v45 = vmul.f32 %v464_v32, %v457_v38  ;;  %v472_v46 = vmul.f32 %v468_v33, %v456_v37  ;;  %v597_v30 = vld [vmem:[%s1902_s2] sm:$0xff]  ;;  %v1467_v32 = vmov 0  }
  0xba   : > { %1260 = vmatpush1.bf16.msra.mxu0 %v1259_v31  ;;  %v1035_v31 = vld [vmem:[%s1908_s8] sm:$0xff]  ;;  %1351 = vset.pattern.permute.xlu0 %v1467_v32 }
  0xbb   : > { %v478_v39 = vpop.permute.xlu1 %477  ;;  %v476_v40 = vpop.permute.xlu0 %475  ;;  %1352 = vset.pattern.permute.xlu1 %v1467_v32  ;;  %v779_v32 = vld [vmem:[#allocation3 + $0x2] ss:$8 sm:$0x3] }
  0xbc   : > { %v480_v41 = vsel %vm479_vm3, %v476_v40, %v478_v39  ;;  %v481_v42 = vsel %vm479_vm3, %v478_v39, %v476_v40 }
  0xbd   : > { %v495_v47 = vmul.f32 %v488_v34, %v481_v42  ;;  %v496_v48 = vmul.f32 %v492_v35, %v480_v41 }
  0xbf   : > { %v504_v49 = vpop.permute.xlu1 %503  ;;  %v502_v50 = vpop.permute.xlu0 %501  ;;  %v1261_v51 = vpack.c.bf16 %v496_v48, %v472_v46  ;;  %v1263_v52 = vpack.c.bf16 %v495_v47, %v471_v45 }
  0xc0   : > { %v506_v53 = vsel %vm505_vm4, %v502_v50, %v504_v49  ;;  %v507_v54 = vsel %vm505_vm4, %v504_v49, %v502_v50 }
  0xc1   : > { %v521_v55 = vmul.f32 %v514_v43, %v506_v53  ;;  %v522_v56 = vmul.f32 %v518_v44, %v507_v54  ;;  %1262 = vmatprep.subr.bf16.mxu0 %v1261_v51 }
  0xc2   : > { %1264 = vmatpush1.bf16.msra.mxu0 %v1263_v52 }
  0xc3   : > { %v528_v59 = vpop.permute.xlu1 %527  ;;  %v526_v60 = vpop.permute.xlu0 %525  ;;  %v1265_v61 = vpack.c.bf16 %v522_v56, %v1623_v1  ;;  %v1267_v62 = vpack.c.bf16 %v521_v55, %v1617_v0 }
  0xc4   : > { %v530_v10 = vsel %vm529_vm5, %v526_v60, %v528_v59  ;;  %v531_v11 = vsel %vm529_vm5, %v528_v59, %v526_v60 }
  0xc5   : > { %1266 = vmatprep.subr.bf16.mxu0 %v1265_v61  ;;  %v545_v17 = vmul.f32 %v538_v63, %v530_v10  ;;  %v546_v18 = vmul.f32 %v542_v3, %v531_v11 }
  0xc6   : > { %1268 = vmatpush1.bf16.msra.mxu0 %v1267_v62 }
  0xc7   : > { %v552_v12 = vpop.permute.xlu1 %551  ;;  %v550_v13 = vpop.permute.xlu0 %549 }
  0xc8   : > { %v554_v14 = vsel %vm553_vm6, %v550_v13, %v552_v12  ;;  %v555_v15 = vsel %vm553_vm6, %v552_v12, %v550_v13  ;;  %v735_v12 = vld [vmem:[#allocation3] ss:$8 sm:$0x3]  ;;  %v757_v13 = vld [vmem:[#allocation3 + $0x1] ss:$8 sm:$0x3] }
  0xc9   : > { %v569_v19 = vmul.f32 %v562_v4, %v554_v14  ;;  %v570_v20 = vmul.f32 %v566_v8, %v555_v15  ;;  %v1000_v4 = vld [vmem:[%s1906_s6] sm:$0xff]  ;;  %v740_v15 = vrot.slane %v735_v12, %v1657_v6 }
  0xca   : > { %v1001_v8 = vld [vmem:[%s1907_s7] sm:$0xff] }
  0xcb   : > { %v576_v22 = vpop.permute.xlu1 %575  ;;  %v1269_v23 = vpack.c.bf16 %v570_v20, %v546_v18  ;;  %v574_v24 = vpop.permute.xlu0 %573  ;;  %v1271_v25 = vpack.c.bf16 %v569_v19, %v545_v17  ;;  %v744_v17 = vrot.slane %v735_v12, %v1659_v7  ;;  %v766_v18 = vrot.slane %v757_v13, %v1659_v7 }
  0xcc   : > { %v578_v26 = vsel %vm577_vm7, %v574_v24, %v576_v22  ;;  %v579_v27 = vsel %vm577_vm7, %v576_v22, %v574_v24 }
  0xcd   : > { %1270 = vmatprep.subr.bf16.mxu0 %v1269_v23  ;;  %v594_v28 = vmul.f32 %v590_v16, %v579_v27  ;;  %v593_v29 = vmul.f32 %v586_v21, %v578_v26  ;;  %v762_v16 = vrot.slane %v757_v13, %v1657_v6  ;;  %v891_v13 = vld [vmem:[#allocation3 + $0x10] ss:$8 sm:$0x3] }
  0xce   : > { %1272 = vmatpush1.bf16.msra.mxu0 %v1271_v25 }
  0xcf   : > { %636 = vmatprep.subr.mxu0 %v594_v28 }
  0xd2   : > { %637 = vmatpush1.msra.mxu0 %v593_v29 }
  0xd3   : > { %1247 = vmatmul.mubr.msk.f32.vlgmr.msra.gmra.mrb[0].mxu0 %vm616_vm8, %v597_v30  ;;  %1040 = vmatprep.subr.mxu0 %v1623_v1 }
  0xd4   : > { %1041 = vmatpush1.msra.mxu0 %v1617_v0  ;;  %1104 = vmatprep.mubr.f32.mxu0 %v1464_v2  ;;  %v692_v0 = vld [vmem:[%s1904_s4] sm:$0xff] }
  0xd5   : > { %v691_v2 = vld [vmem:[%s1903_s3] sm:$0xff] }
  0xd7   : > { %1249 = vmatmul.mubr.msk.f32.vlgmr.msra.gmra.mrb[2].mxu0 %vm1036_vm9, %v1035_v31 }
 0x1a6   : > { %v686_v33 = vpop.f32.mrb[0].mxu0 }
 0x1a7   : > { %v688_v34 = vpop.f32.mrb[1].mxu0  ;;  %v696_v35 = vmul.f32 %v686_v33, %v686_v33 }
 0x1a8   : > { %v693_v36 = vadd.f32 %v688_v34, %v686_v33  ;;  %v697_v37 = vmul.f32 %v688_v34, %v688_v34 }
 0x1aa   : > { %694 = vadd.xlane.f32.xlu0 %v693_v36  ;;  %v698_v1 = vadd.f32 %v697_v37, %v696_v35  ;;  %v1735_v38 = vpop.f32.mrb[2].mxu0  ;;  %v784_v36 = vrot.slane %v779_v32, %v1657_v6  ;;  %v788_v37 = vrot.slane %v779_v32, %v1659_v7 }
 0x1ab   : > { %v1737_v39 = vpop.f32.mrb[3].mxu0  ;;  %v1116_v63 = vmul.f32 %v1735_v38, %v1735_v38 }
 0x1ac   : > { %699 = vadd.xlane.f32.xlu1 %v698_v1  ;;  %v1113_v40 = vadd.f32 %v1737_v39, %v1735_v38  ;;  %v1117_v62 = vmul.f32 %v1737_v39, %v1737_v39 }
 0x1ae   : > { %v1118_v3 = vadd.f32 %v1117_v62, %v1116_v63  ;;  %v869_v62 = vld [vmem:[#allocation3 + $0x7] ss:$8 sm:$0x3] }
 0x1af   : > { %v878_v12 = vrot.slane %v869_v62, %v1659_v7 }
 0x1bd   : > { %722 = vperm.xlu1 %1352, %v692_v0  }
 0x1c0   : > { %715 = vperm.xlu0 %1351, %v691_v2   ;;  %v825_v2 = vld [vmem:[#allocation3 + $0x5] ss:$8 sm:$0x3] }
 0x237   : > { %v695_v41 = vpop.xlane.xlu0 %694 }
 0x238   : > { %v702_v42 = vmul.f32 0.00390625, %v695_v41 }
 0x239   : > { %v700_v43 = vpop.xlane.xlu1 %699 }
 0x23a   : > { %v703_v44 = vmul.f32 0.00390625, %v700_v43  ;;  %v704_v45 = vmul.f32 %v702_v42, %v702_v42  ;;  %v707_v49 = vsub.f32 %v686_v33, %v702_v42  ;;  %v708_v50 = vsub.f32 %v688_v34, %v702_v42  ;;  %v801_v33 = vld [vmem:[#allocation3 + $0x3] ss:$8 sm:$0x3] }
 0x23b   : > { %v806_v1 = vrot.slane %v801_v33, %v1657_v6  ;;  %v810_v0 = vrot.slane %v801_v33, %v1659_v7 }
 0x23c   : > { %v705_v46 = vsub.f32 %v703_v44, %v704_v45  ;;  %v830_v45 = vrot.slane %v825_v2, %v1657_v6 }
 0x23d   : > { %v723_v55 = vpop.permute.xlu1 %722 }
 0x23e   : > { %v706_v47 = vmax.f32 %v705_v46, 0.0  ;;  %v834_v46 = vrot.slane %v825_v2, %v1659_v7 }
 0x23f   : > { %v716_v52 = vpop.permute.xlu0 %715 }
 0x240   : > { %v709_v48 = vadd.f32 1e-05, %v706_v47 }
 0x242   : > { %1353 = vrsqrt.f32 %v709_v48 }
 0x24c   : > { %v1354_v51 = vpop.eup %1353 }
 0x24d   : > { %v711_v53 = vmul.f32 %v1354_v51, %v707_v49  ;;  %v712_v54 = vmul.f32 %v1354_v51, %v708_v50 }
 0x24f   : > { %v718_v56 = vmul.f32 %v716_v52, %v711_v53  ;;  %v719_v57 = vmul.f32 %v716_v52, %v712_v54 }
 0x251   : > { %v725_v58 = vadd.f32 %v723_v55, %v718_v56  ;;  %v726_v59 = vadd.f32 %v723_v55, %v719_v57 }
 0x253   : > { %v1741_v60 = vmax.f32 %v725_v58, 0.0  ;;  %v1747_v61 = vmax.f32 %v726_v59, 0.0  ;;  %v847_v59 = vld [vmem:[#allocation3 + $0x6] ss:$8 sm:$0x3] }
 0x255   : > { %795 = vrot.lane.b32.xlu0 %v1741_v60, %s1461_s15  ;;  %729 = vrot.lane.b32.xlu1 %v1741_v60, %s1459_s29 }
 0x259   : > { %819 = vrot.lane.b32.xlu0 %v1741_v60, %s1462_s22  ;;  %731 = vrot.lane.b32.xlu1 %v1747_v61, %s1459_s29  ;;  %s1256_s29 = sshll.u32 %s1550_s21, 8 }
 0x25d   : > { %841 = vrot.lane.b32.xlu0 %v1741_v60, %s1463_s24  ;;  %751 = vrot.lane.b32.xlu1 %v1741_v60, %s1458_s12 }
 0x261   : > { %863 = vrot.lane.b32.xlu0 %v1741_v60, %s1465_s26  ;;  %753 = vrot.lane.b32.xlu1 %v1747_v61, %s1458_s12 }
 0x265   : > { %885 = vrot.lane.b32.xlu0 %v1741_v60, %s1927_s16  ;;  %773 = vrot.lane.b32.xlu1 %v1741_v60, %s1928_s30 }
 0x269   : > { %775 = vrot.lane.b32.xlu1 %v1747_v61, %s1928_s30  ;;  %s392_s30 = sand.u32 1, %s1445_s18  }
 0x26a   : > { %s1244_s12 = sshll.u32 %s392_s30, 4  ;;  %s1153_s21 = scalar_lea.sflag [#allocation5], %s392_s30 }
 0x26d   : > { %797 = vrot.lane.b32.xlu1 %v1747_v61, %s1461_s15  ;;  %s394_s15 = scalar_lea.vmem [#allocation6], %s1244_s12 }
 0x271   : > { %821 = vrot.lane.b32.xlu1 %v1747_v61, %s1462_s22  ;;  %s1167_s22 = sshll.u32 %s394_s15, 4  ;;  %s1858_s22 = int_to_ptr.vmem [resolvable:$true] %s1167_s22 }
 0x272   : > { %s1387_s13 = scalar_lea.vmem %s1858_s22, 256 }
 0x273   : > { %p1388_p6 = scmp.ne.s32.totalorder %s1858_s22, %s1387_s13 }
 0x275   : > { %843 = vrot.lane.b32.xlu1 %v1747_v61, %s1463_s24  ;;  %p1389_p10 = pnand %p1388_p6, %p1929_p9 }
 0x277   : > { %p1390_p12 = pneg %p1389_p10 }
 0x279   : > { %865 = vrot.lane.b32.xlu1 %v1747_v61, %s1465_s26  ;;  %s1856_s26 = scalar_lea.hbm %s1911_s11, %s1256_s29 }
 0x27d   : > { %887 = vrot.lane.b32.xlu1 %v1747_v61, %s1927_s16  ;;  %s1391_s16 = sshll.u32 %s1468_s14, 4  ;;  %s1392_s16 = int_to_ptr.vmem [resolvable:$false] %s1391_s16 }
 0x27e   : > { %s1393_s12 = scalar_lea.vmem %s1392_s16, 512  ;;  %p1394_p2 = scmp.lt.s32.totalorder %s1858_s22, %s1392_s16 }
 0x27f   : > { %p1395_p3 = scmp.lt.s32.totalorder %s1393_s12, %s1387_s13 }
 0x281   : > { %p1396_p4 = por %p1395_p3, %p1394_p2 }
 0x283   : > { %p1397_p7 = pnand %p1396_p4, %p1390_p12 }
 0x284   : > { %1119 = vadd.xlane.f32.xlu0 %v1118_v3 }
 0x2a1   : > { %1114 = vadd.xlane.f32.xlu1 %v1113_v40 }
 0x2b2   : > { %1023 = vperm.xlu1 %1352, %v1000_v4  }
 0x2b6   : > { %1030 = vperm.xlu1 %1352, %v1001_v8  }
 0x2ba   : > { %1141 = vperm.xlu1 %1352, %v1112_v9   ;;  %v852_v9 = vrot.slane %v847_v59, %v1657_v6 }
 0x2c7   : > { %v730_v10 = vpop.permute.xlu1 %729  ;;  %v796_v28 = vpop.permute.xlu0 %795 }
 0x2cb   : > { %v732_v11 = vpop.permute.xlu1 %731  ;;  %v820_v35 = vpop.permute.xlu0 %819 }
 0x2cc   : > { %v733_v19 = vsel %vm408_vm1, %v730_v10, %v732_v11  ;;  %v734_v20 = vsel %vm408_vm1, %v732_v11, %v730_v10  ;;  %v856_v10 = vrot.slane %v847_v59, %v1659_v7  ;;  %v874_v11 = vrot.slane %v869_v62, %v1657_v6 }
 0x2cd   : > { %v747_v24 = vmul.f32 %v740_v15, %v734_v20  ;;  %v748_v26 = vmul.f32 %v744_v17, %v733_v19  ;;  %v900_v17 = vrot.slane %v891_v13, %v1659_v7 }
 0x2cf   : > { %v752_v14 = vpop.permute.xlu1 %751  ;;  %v842_v51 = vpop.permute.xlu0 %841 }
 0x2d3   : > { %v754_v21 = vpop.permute.xlu1 %753  ;;  %v864_v8 = vpop.permute.xlu0 %863 }
 0x2d4   : > { %v755_v22 = vsel %vm431_vm0, %v752_v14, %v754_v21  ;;  %v756_v23 = vsel %vm431_vm0, %v754_v21, %v752_v14 }
 0x2d5   : > { %v769_v25 = vmul.f32 %v762_v16, %v756_v23  ;;  %v770_v27 = vmul.f32 %v766_v18, %v755_v22 }
 0x2d7   : > { %v774_v29 = vpop.permute.xlu1 %773  ;;  %v1273_v30 = vpack.c.bf16 %v770_v27, %v748_v26  ;;  %v1275_v31 = vpack.c.bf16 %v769_v25, %v747_v24  ;;  %v886_v22 = vpop.permute.xlu0 %885  ;;  %v896_v26 = vrot.slane %v891_v13, %v1657_v6 }
 0x2d9   : > { %1274 = vmatprep.subr.bf16.mxu1 %v1273_v30  ;;  %v907_v30 = vld [vmem:[%s1905_s5] sm:$0xff] }
 0x2da   : > { %1276 = vmatpush1.bf16.msra.mxu1 %v1275_v31 }
 0x2db   : > { %v776_v34 = vpop.permute.xlu1 %775 }
 0x2dc   : > { %v777_v40 = vsel %vm455_vm2, %v774_v29, %v776_v34  ;;  %v778_v41 = vsel %vm455_vm2, %v776_v34, %v774_v29 }
 0x2dd   : > { %v791_v47 = vmul.f32 %v784_v36, %v778_v41  ;;  %v792_v48 = vmul.f32 %v788_v37, %v777_v40 }
 0x2df   : > { %v798_v42 = vpop.permute.xlu1 %797 }
 0x2e0   : > { %v799_v43 = vsel %vm479_vm3, %v796_v28, %v798_v42  ;;  %v800_v44 = vsel %vm479_vm3, %v798_v42, %v796_v28 }
 0x2e1   : > { %v813_v49 = vmul.f32 %v806_v1, %v800_v44  ;;  %v814_v50 = vmul.f32 %v810_v0, %v799_v43 }
 0x2e3   : > { %v822_v52 = vpop.permute.xlu1 %821  ;;  %v1277_v53 = vpack.c.bf16 %v814_v50, %v792_v48  ;;  %v1279_v54 = vpack.c.bf16 %v813_v49, %v791_v47 }
 0x2e4   : > { %v823_v55 = vsel %vm505_vm4, %v820_v35, %v822_v52  ;;  %v824_v56 = vsel %vm505_vm4, %v822_v52, %v820_v35  ;;  %v1111_v35 = vld [vmem:[%s1909_s9] sm:$0xff] }
 0x2e5   : > { %v837_v57 = vmul.f32 %v830_v45, %v823_v55  ;;  %v838_v58 = vmul.f32 %v834_v46, %v824_v56  ;;  %1278 = vmatprep.subr.bf16.mxu1 %v1277_v53 }
 0x2e6   : > { %1280 = vmatpush1.bf16.msra.mxu1 %v1279_v54 }
 0x2e7   : > { %v844_v63 = vpop.permute.xlu1 %843  ;;  %v1281_v3 = vpack.c.bf16 %v838_v58, %v1747_v61  ;;  %v1283_v4 = vpack.c.bf16 %v837_v57, %v1741_v60 }
 0x2e8   : > { %v845_v14 = vsel %vm529_vm5, %v842_v51, %v844_v63  ;;  %v846_v15 = vsel %vm529_vm5, %v844_v63, %v842_v51 }
 0x2e9   : > { %1282 = vmatprep.subr.bf16.mxu1 %v1281_v3  ;;  %v859_v18 = vmul.f32 %v852_v9, %v845_v14  ;;  %v860_v19 = vmul.f32 %v856_v10, %v846_v15 }
 0x2ea   : > { %1284 = vmatpush1.bf16.msra.mxu1 %v1283_v4 }
 0x2eb   : > { %v866_v61 = vpop.permute.xlu1 %865 }
 0x2ec   : > { %v867_v60 = vsel %vm553_vm6, %v864_v8, %v866_v61  ;;  %v868_v16 = vsel %vm553_vm6, %v866_v61, %v864_v8 }
 0x2ed   : > { %v881_v20 = vmul.f32 %v874_v11, %v867_v60  ;;  %v882_v21 = vmul.f32 %v878_v12, %v868_v16 }
 0x2ef   : > { %v888_v23 = vpop.permute.xlu1 %887  ;;  %v1285_v24 = vpack.c.bf16 %v882_v21, %v860_v19  ;;  %v1287_v25 = vpack.c.bf16 %v881_v20, %v859_v18 }
 0x2f0   : > { %v890_v27 = vsel %vm577_vm7, %v888_v23, %v886_v22  ;;  %v889_v28 = vsel %vm577_vm7, %v886_v22, %v888_v23 }
 0x2f1   : > { %v904_v29 = vmul.f32 %v900_v17, %v890_v27  ;;  %1286 = vmatprep.subr.bf16.mxu1 %v1285_v24  ;;  %v903_v7 = vmul.f32 %v896_v26, %v889_v28 }
 0x2f2   : > { %1288 = vmatpush1.bf16.msra.mxu1 %v1287_v25 }
 0x2f3   : > { %945 = vmatprep.subr.mxu1 %v904_v29 }
 0x2f6   : > { %946 = vmatpush1.msra.mxu1 %v903_v7 }
 0x2f7   : > { %1248 = vmatmul.mubr.msk.f32.vlgmr.msra.gmra.mrb[0].mxu1 %vm616_vm8, %v907_v30 }
 0x311   : > { %v1120_v1 = vpop.xlane.xlu0 %1119 }
 0x312   : > { %v1122_v0 = vmul.f32 0.00390625, %v1120_v1 }
 0x32e   : > { %v1115_v36 = vpop.xlane.xlu1 %1114 }
 0x32f   : > { %v1121_v37 = vmul.f32 0.00390625, %v1115_v36 }
 0x331   : > { %v1123_v2 = vmul.f32 %v1121_v37, %v1121_v37  ;;  %v1126_v52 = vsub.f32 %v1735_v38, %v1121_v37  ;;  %v1127_v53 = vsub.f32 %v1737_v39, %v1121_v37 }
 0x332   : > { %v1024_v51 = vpop.permute.xlu1 %1023 }
 0x333   : > { %v1124_v40 = vsub.f32 %v1122_v0, %v1123_v2 }
 0x335   : > { %v1125_v42 = vmax.f32 %v1124_v40, 0.0 }
 0x336   : > { %v1031_v55 = vpop.permute.xlu1 %1030 }
 0x337   : > { %v1128_v45 = vadd.f32 1e-05, %v1125_v42 }
 0x339   : > { %1355 = vrsqrt.f32 %v1128_v45 }
 0x33a   : > { %v1142_v11 = vpop.permute.xlu1 %1141 }
 0x343   : > { %v1356_v54 = vpop.eup %1355 }
 0x344   : > { %v1130_v59 = vmul.f32 %v1356_v54, %v1126_v52  ;;  %v1131_v62 = vmul.f32 %v1356_v54, %v1127_v53 }
 0x3ca   : > { %v995_v31 = vpop.f32.mrb[0].mxu1 }
 0x3cb   : > { %v997_v6 = vpop.f32.mrb[1].mxu1  ;;  %v1005_v32 = vmul.f32 %v995_v31, %v995_v31 }
 0x3cc   : > { %v1006_v33 = vmul.f32 %v997_v6, %v997_v6  ;;  %v1002_v34 = vadd.f32 %v997_v6, %v995_v31 }
 0x3ce   : > { %1003 = vadd.xlane.f32.xlu0 %v1002_v34  ;;  %v1007_v5 = vadd.f32 %v1006_v33, %v1005_v32 }
 0x3d2   : > { %1008 = vadd.xlane.f32.xlu0 %v1007_v5 }
 0x3e8   : > { %1134 = vperm.xlu0 %1351, %v1111_v35  }
 0x45b   : > { %v1004_v41 = vpop.xlane.xlu0 %1003 }
 0x45c   : > { %v1010_v43 = vmul.f32 0.00390625, %v1004_v41 }
 0x45e   : > { %v1012_v46 = vmul.f32 %v1010_v43, %v1010_v43  ;;  %v1015_v57 = vsub.f32 %v995_v31, %v1010_v43  ;;  %v1016_v58 = vsub.f32 %v997_v6, %v1010_v43 }
 0x45f   : > { %v1009_v44 = vpop.xlane.xlu0 %1008 }
 0x460   : > { %v1011_v47 = vmul.f32 0.00390625, %v1009_v44 }
 0x462   : > { %v1013_v48 = vsub.f32 %v1011_v47, %v1012_v46 }
 0x464   : > { %v1014_v49 = vmax.f32 %v1013_v48, 0.0 }
 0x466   : > { %v1017_v50 = vadd.f32 1e-05, %v1014_v49 }
 0x467   : > { %v1135_v56 = vpop.permute.xlu0 %1134 }
 0x468   : > { %1357 = vrsqrt.f32 %v1017_v50  ;;  %v1137_v8 = vmul.f32 %v1135_v56, %v1130_v59  ;;  %v1138_v9 = vmul.f32 %v1135_v56, %v1131_v62 }
 0x46a   : > { %v1144_v13 = vadd.f32 %v1142_v11, %v1137_v8  ;;  %v1145_v14 = vadd.f32 %v1142_v11, %v1138_v9 }
 0x472   : > { %v1358_v63 = vpop.eup %1357 }
 0x473   : > { %v1019_v3 = vmul.f32 %v1358_v63, %v1015_v57  ;;  %v1020_v4 = vmul.f32 %v1358_v63, %v1016_v58 }
 0x475   : > { %v1026_v10 = vmul.f32 %v1024_v51, %v1019_v3  ;;  %v1027_v38 = vmul.f32 %v1024_v51, %v1020_v4 }
 0x477   : > { %v1033_v39 = vadd.f32 %v1031_v55, %v1026_v10  ;;  %v1034_v12 = vadd.f32 %v1031_v55, %v1027_v38 }
 0x479   : > { %v1146_v15 = vadd.f32 %v1144_v13, %v1033_v39  ;;  %v1147_v61 = vadd.f32 %v1145_v14, %v1034_v12 }
 0x47b   : > { %v1148_v60 = vmax.f32 %v1146_v15, 0.0  ;;  %v1149_v16 = vmax.f32 %v1147_v61, 0.0 }
 0x47d   : > { %1150 = vst [vmem:[%s394_s15] sm:$0xff] %v1148_v60  ;;  %1151 = vst [vmem:[%s394_s15 + $0x8] sm:$0xff] %v1149_v16 }
 0x47e   : > { %1400 = shalt.err (!%p1397_p7)
}
 0x47f   : > { %s1401_s30 = scalar_lea.hbm %s1856_s26, 256  ;;  %s1405_s24 = scalar_lea.hbm %s1911_s11, 512 }
 0x480   : > { %p1402_p8 = scmp.ne.s32.totalorder %s1856_s26, %s1401_s30  ;;  %p1406_p1 = scmp.lt.u32.totalorder %s1856_s26, %s1911_s11 }
 0x481   : > { %p1407_p0 = scmp.lt.u32.totalorder %s1405_s24, %s1401_s30  ;;  %p1409_p6 = scmp.lt.u32.totalorder %s1401_s30, %s1856_s26 }
 0x482   : > { %p1403_p11 = pnand %p1402_p8, %p1929_p9 }
 0x483   : > { %p1408_p5 = por %p1407_p0, %p1406_p1 }
 0x484   : > { %p1404_p13 = pneg %p1403_p11 }
 0x485   : > { %p1410_p10 = por %p1409_p6, %p1408_p5 }
 0x487   : > { %p1411_p12 = pnand %p1410_p10, %p1404_p13 }
 0x489   : > { %1414 = shalt.err (!%p1411_p12)
}
 0x48a   : > { %1293 = dma.vmem_to_hbm [thread:$0]  (%p1929_p9), %s1858_s22, 256, %s1856_s26, %s1153_s21  }
 0x48b PF: > { %p1305_p2 = scmp.ge.s32.totalorder %s1453_s20, 2  ;;  %s1179_s13 = sand.u32 1, %s1441_s17  }
 0x48c   : > { %p1930_p3 = scmp.ne.s32.totalorder %s1921_s28, 0  ;;  %s1180_s16 = scalar_lea.sflag [#allocation5], %s1179_s13 }
 0x48e   : > { %p1300_p4 = pnand %p1305_p2, %p1930_p3 }
 0x490   : > { %1436 = dma.done.wait (!%p1300_p4), %s1180_s16, 256  }
 0x491   : > { %1438 = vsyncadd (!%p1300_p4), %s1180_s16, 4294967040  ;;  %s1931_s12 = sld [smem:[#allocation9_spill]]  ;;  %p22_p7 = scmp.ge.s32.totalorder %s1554_s23, 4  }
 0x492   : > { %s1932_s17 = smov %s1445_s18  ;;  %s1933_s18 = smov %s1449_s19 }
 0x493   : > { %s1935_s20 = smov %s1554_s23  ;;  %24 = sbr.rel (!%p22_p7) target bundleno = 4 (0x4), region = 111 }
 0x497   : > { %s1934_s19 = smov %s1931_s12 }
 0x49a   :  { %1185 = vsyncpa [#allocation4], 1 }
 0x49b   :  { %1187 = vsyncpa [#allocation4 + $0x1], 1 }
 0x49c   :  { %1188 = vsyncpa [#allocation5], 1 }
 0x49d   :  { %1190 = vsyncpa [#allocation5 + $0x1], 1 }

</bundles_post_ra>
